<compile_context>
chip_gen: v6e
topology: v6e:2x2x1
jax: 0.10.0
libtpu: 0.0.40
codegen_flags: <defaults>
</compile_context>

<pallas_src>
import collections

import numpy as np
import jax
import jax.numpy as jnp
from jax.experimental import pallas as pl
from jax.experimental.pallas import tpu as pltpu

HEAD_W = 128   # lane-dense width of the fused head-output slab
POOL1_K = 4    # 2x2 pool-1 window offsets
POOL2_K = 4    # 2x2 pool-2 window offsets
CONV2_K = 9    # 3x3 conv-2 kernel offsets


# ----------------------------- geometry ------------------------------------

Geom = collections.namedtuple("Geom", "h1 w1 hp1 wp1 h2 w2 hp2 wp2")


def _conv_out(d, k, s):
    return (d - k) // s + 1


def _pool_out(d, k, s):          # ceil_mode=True, padding=0
    return -(-(d - k) // s) + 1


def _geometry(h, w):
    h1, w1 = _conv_out(h, 3, 3), _conv_out(w, 3, 3)
    hp1, wp1 = _pool_out(h1, 2, 2), _pool_out(w1, 2, 2)
    h2, w2 = _conv_out(hp1, 3, 1), _conv_out(wp1, 3, 1)
    hp2, wp2 = _pool_out(h2, 2, 1), _pool_out(w2, 2, 1)
    assert min(h1, w1, h2, w2) > 0, "input too small for the feature extractor"
    # torch's .view(-1, ndf*2) is only a per-image channel vector when the
    # feature extractor ends at 1x1 spatial (true for 21x21 inputs).
    assert hp2 == 1 and wp2 == 1, "feature extractor must end at 1x1 spatial"
    return Geom(h1, w1, hp1, wp1, h2, w2, hp2, wp2)


# ------------------- wrapper-side patch-ordering constants ------------------

def build_constants(n, cin, h, w):
    """Gather indices turning the raw input into conv1 patches pre-ordered by
    (pool1 offset, conv2 offset, pool2 offset, image).  Built once in numpy per
    (batch, cin, H, W); the index table is ~10 KB for the demo shapes."""
    g = _geometry(h, w)
    r2r = POOL2_K * n
    idx = np.zeros((POOL1_K * r2r, CONV2_K * cin * 9), np.int32)
    for kk in range(POOL1_K):                       # pool1 window offset (max'd in kernel)
        dh, dw = divmod(kk, 2)
        for q in range(POOL2_K):                    # pool2 window offset (max'd in kernel)
            eh, ew = divmod(q, 2)
            # ceil-mode OOB pool2 offsets duplicate position (0,0): max(a,a)=a.
            oh = eh if eh < g.h2 else 0
            ow = ew if ew < g.w2 else 0
            for b in range(n):
                t = kk * r2r + q * n + b
                for k2 in range(CONV2_K):           # conv2 kernel offset (lane axis)
                    ih, iw = divmod(k2, 3)
                    ph, pw = oh + ih, ow + iw       # pool1-output position conv2 reads
                    sh, sw = ph * 2 + dh, pw * 2 + dw   # conv1-output position
                    if sh >= g.h1 or sw >= g.w1:    # ceil-mode OOB pool1 offset
                        sh, sw = ph * 2, pw * 2     #   -> duplicate offset (0,0)
                    for c in range(cin):
                        for u in range(3):
                            for v in range(3):
                                col = (k2 * cin + c) * 9 + u * 3 + v
                                idx[t, col] = (((b * cin + c) * h + sh * 3 + u) * w
                                               + sw * 3 + v)
    return {"gidx": jnp.asarray(idx), "geom": g}


# -------------------------- weight pre-packing ------------------------------

def _row_layout(sizes):
    """8-aligned row offsets for a list of (name, nrows); returns (offsets, total)."""
    off, r = {}, 0
    for name, rows in sizes:
        off[name] = r
        r = -(-(r + rows) // 8) * 8
    return off, r


def _wcv_sizes(ndf, cin):
    k1, kw, nd2 = cin * 9, CONV2_K * ndf, 2 * ndf
    return [("w1bd", CONV2_K * k1), ("b1", 1), ("w2", kw), ("b2", 1),
            ("fw", nd2), ("fb", 1)]


def _whd_sizes(ndf):
    return [("hw1", ndf), ("hb1", 1), ("hw2", ndf), ("hb2", 1)]


def pack_params(params, ndf, nclasses, cin=1):
    """Pre-pack ALL weights ONCE (not per call) into two DMA-friendly slabs."""
    assert 1 + nclasses <= HEAD_W
    f32 = jnp.float32
    k1, kw, nd2 = cin * 9, CONV2_K * ndf, 2 * ndf

    # conv1 as a block-diagonal GEMM operand: one copy of (cin*9, ndf) per conv2
    # kernel offset, so the single conv1 matmul directly emits conv2's im2col
    # columns (k2*ndf + ci) on the lane axis -- no in-kernel gather needed.
    w1m = params["conv1_w"].reshape(ndf, k1).T.astype(f32)            # (cin*9, ndf)
    w1bd = jnp.zeros((CONV2_K * k1, kw), f32)
    for k2 in range(CONV2_K):
        w1bd = w1bd.at[k2 * k1:(k2 + 1) * k1, k2 * ndf:(k2 + 1) * ndf].set(w1m)
    b1t = jnp.tile(params["conv1_b"].reshape(1, ndf).astype(f32), (1, CONV2_K))
    w2f = params["conv2_w"].transpose(2, 3, 1, 0).reshape(kw, nd2).astype(f32)
    b2 = params["conv2_b"].reshape(1, nd2).astype(f32)
    fw = params["femb_w"].T.astype(f32)                               # (2ndf, ndf)
    fb = params["femb_b"].reshape(1, ndf).astype(f32)

    coff, crows = _row_layout(_wcv_sizes(ndf, cin))
    wcv = jnp.zeros((crows, kw), f32)
    for name, a in [("w1bd", w1bd), ("b1", b1t), ("w2", w2f), ("b2", b2),
                    ("fw", fw), ("fb", fb)]:
        wcv = wcv.at[coff[name]:coff[name] + a.shape[0], :a.shape[1]].set(a)

    # Fused classifier heads: concatenated first layer, block-diagonal
    # lane-padded (ndf, 128) second layer; sigmoid head lives on lane 0.
    hw1 = jnp.concatenate([params["s1_w"].T, params["c1_w"].T], axis=1).astype(f32)
    hb1 = jnp.concatenate([params["s1_b"], params["c1_b"]]).reshape(1, ndf).astype(f32)
    hw2 = jnp.zeros((ndf, HEAD_W), f32)
    hw2 = hw2.at[:ndf // 2, 0].set(params["s2_w"][0].astype(f32))
    hw2 = hw2.at[ndf // 2:, 1:1 + nclasses].set(params["c2_w"].T.astype(f32))
    hb2 = jnp.zeros((1, HEAD_W), f32)
    hb2 = hb2.at[0, 0].set(params["s2_b"][0]).at[0, 1:1 + nclasses].set(params["c2_b"])

    hoff, hrows = _row_layout(_whd_sizes(ndf))
    whd = jnp.zeros((hrows, HEAD_W), f32)
    for name, a in [("hw1", hw1), ("hb1", hb1), ("hw2", hw2), ("hb2", hb2)]:
        whd = whd.at[hoff[name]:hoff[name] + a.shape[0], :a.shape[1]].set(a)

    return {"wcv": wcv, "whd": whd}


# ------------------------------ fused kernel --------------------------------

def _make_netd_kernel(n, mf, ndf, cin, mrows):
    k1, kw, nd2 = cin * 9, CONV2_K * ndf, 2 * ndf
    r2r = POOL2_K * n
    coff, _ = _row_layout(_wcv_sizes(ndf, cin))
    hoff, _ = _row_layout(_whd_sizes(ndf))
    npad = mrows - n - mf

    def kernel(p_ref, femb_ref, wcv_ref, whd_ref, o_ref):
        f32 = jnp.float32

        def dot(a, b):
            return jnp.dot(a, b, preferred_element_type=f32)

        # --- unpack the two packed weight slabs (static ref slices) ---
        w1bd = wcv_ref[coff["w1bd"]:coff["w1bd"] + CONV2_K * k1, :]
        b1 = wcv_ref[coff["b1"]:coff["b1"] + 1, :]
        w2 = wcv_ref[coff["w2"]:coff["w2"] + kw, 0:nd2]
        b2 = wcv_ref[coff["b2"]:coff["b2"] + 1, 0:nd2]
        fw = wcv_ref[coff["fw"]:coff["fw"] + nd2, 0:ndf]
        fb = wcv_ref[coff["fb"]:coff["fb"] + 1, 0:ndf]
        hw1 = whd_ref[hoff["hw1"]:hoff["hw1"] + ndf, 0:ndf]
        hb1 = whd_ref[hoff["hb1"]:hoff["hb1"] + 1, 0:ndf]
        hw2 = whd_ref[hoff["hw2"]:hoff["hw2"] + ndf, :]
        hb2 = whd_ref[hoff["hb2"]:hoff["hb2"] + 1, :]

        # conv1: ONE block-diagonal GEMM computes every conv1 value needed by
        # every (pool1 offset, conv2 offset, pool2 offset, image); the conv2
        # offset lands on the LANE axis so conv2's im2col needs no gather.
        a1 = dot(p_ref[...], w1bd) + b1                         # (4*r2r, 9*ndf)

        # pool1 (2,2, ceil): VPU max over the 4 window offsets (8-aligned
        # static slices; OOB offsets were pre-duplicated in the wrapper order).
        g = a1[0:r2r, :]
        for kk in range(1, POOL1_K):
            g = jnp.maximum(g, a1[kk * r2r:(kk + 1) * r2r, :])  # (r2r, 9*ndf)

        # conv2 (3x3, stride 1): single K=9*ndf GEMM (g IS the im2col matrix).
        a2 = dot(g, w2) + b2                                    # (r2r, 2*ndf)

        # pool2 (2,1, ceil) -> 1x1 spatial == torch .view(-1, ndf*2).
        feat = a2[0:n, :]
        for q in range(1, POOL2_K):
            feat = jnp.maximum(feat, a2[q * n:(q + 1) * n, :])  # (n, 2*ndf)

        # f_emb linear.
        emb = dot(feat, fw) + fb                                # (n, ndf)

        # Fused classifier_s / classifier_c heads, evaluated ONCE on the
        # concatenated [image-batch embeddings ; f_emb ; zero padding] rows and
        # written with a single unmasked lane-dense (mrows, 128) store.
        pieces = [emb, femb_ref[...]]
        if npad:
            pieces.append(jnp.zeros((npad, ndf), f32))
        rows = jnp.concatenate(pieces, axis=0)                  # (mrows, ndf)
        hmid = dot(rows, hw1) + hb1
        hmid = jnp.where(hmid >= 0.0, hmid, 0.2 * hmid)         # LeakyReLU(0.2)
        o = dot(hmid, hw2) + hb2                                # (mrows, 128)
        col = jax.lax.broadcasted_iota(jnp.int32, o.shape, 1)
        o_ref[...] = jnp.where(col == 0, jax.nn.sigmoid(o), o)

    return kernel


# ------------------------------- wrapper ------------------------------------

def netd_forward(packed, consts, x, f_emb, ndf, nclasses, f_emb_rvs=None):
    # `f_emb_rvs` only renames the returned variable in the reference module.
    n, cin, h, w = x.shape
    mf = f_emb.shape[0]
    gidx = consts["gidx"]
    r2r = POOL2_K * n
    assert gidx.shape == (POOL1_K * r2r, CONV2_K * cin * 9), "constants/batch mismatch"
    mrows = -(-(n + mf) // 8) * 8            # pad head rows to a full sublane tile

    # Layout plumbing only: gather the raw input into pre-ordered conv1 patches
    # (a single 32x81 f32 tensor at the demo shapes); fused by XLA into the
    # feed of the single pallas_call.
    patches = jnp.take(x.reshape(-1).astype(jnp.float32), gidx, axis=0)

    args = (patches, f_emb.astype(jnp.float32), packed["wcv"], packed["whd"])
    kw = CONV2_K * ndf
    flops = 2 * (patches.shape[0] * patches.shape[1] * kw          # conv1 (block-diag)
                 + r2r * kw * 2 * ndf                              # conv2
                 + n * 2 * ndf * ndf                               # f_emb
                 + mrows * (ndf * ndf + ndf * HEAD_W))             # fused heads
    bytes_accessed = sum(int(np.prod(a.shape)) * 4 for a in args) + mrows * HEAD_W * 4

    # One fused kernel; the whole working set (<100 KB) stays resident in VMEM
    # and there are only 4 input DMAs + 1 unmasked lane-dense output store.
    # At larger batch sizes: add a leading grid axis over images with
    # dimension_semantics=("parallel", ...) to shard across v7x's two
    # TensorCores and restore pipelining; not useful at batch=2.
    out = pl.pallas_call(
        _make_netd_kernel(n, mf, ndf, cin, mrows),
        out_shape=jax.ShapeDtypeStruct((mrows, HEAD_W), jnp.float32),
        grid=(1,),
        in_specs=[pl.BlockSpec(a.shape, lambda i: (0, 0)) for a in args],
        out_specs=pl.BlockSpec((mrows, HEAD_W), lambda i: (0, 0)),
        compiler_params=pltpu.CompilerParams(dimension_semantics=("arbitrary",)),
        cost_estimate=pl.CostEstimate(flops=int(flops),
                                      transcendentals=int(mrows * HEAD_W),
                                      bytes_accessed=int(bytes_accessed)),
    )(*args)

    output_s = out[:n, 0]                       # sigmoid head, image batch
    output_c = out[:n, 1:1 + nclasses]          # class head,   image batch
    output_s_f = out[n:n + mf, 0]               # sigmoid head, f_emb rows
    output_c_f = out[n:n + mf, 1:1 + nclasses]  # class head,   f_emb rows
    return output_s, output_c, output_s_f, output_c_f


# ------------------------------ params --------------------------------------

def init_params(key, ndf, nclasses):
    def uniform(k, shape, fan_in):
        bound = 1.0 / float(fan_in) ** 0.5
        return jax.random.uniform(k, shape, jnp.float32, -bound, bound)

    ks = jax.random.split(key, 14)
    return {
        "conv1_w": uniform(ks[0], (ndf, 1, 3, 3), 9),
        "conv1_b": uniform(ks[1], (ndf,), 9),
        "conv2_w": uniform(ks[2], (2 * ndf, ndf, 3, 3), ndf * 9),
        "conv2_b": uniform(ks[3], (2 * ndf,), ndf * 9),
        "femb_w": uniform(ks[4], (ndf, 2 * ndf), 2 * ndf),
        "femb_b": uniform(ks[5], (ndf,), 2 * ndf),
        "c1_w": uniform(ks[6], (ndf // 2, ndf), ndf),
        "c1_b": uniform(ks[7], (ndf // 2,), ndf),
        "c2_w": uniform(ks[8], (nclasses, ndf // 2), ndf // 2),
        "c2_b": uniform(ks[9], (nclasses,), ndf // 2),
        "s1_w": uniform(ks[10], (ndf // 2, ndf), ndf),
        "s1_b": uniform(ks[11], (ndf // 2,), ndf),
        "s2_w": uniform(ks[12], (1, ndf // 2), ndf // 2),
        "s2_b": uniform(ks[13], (1,), ndf // 2),
    }


# ----------------------- pure-JAX reference (check) --------------------------

def netd_forward_ref(params, x, f_emb, ndf):
    def lin(v, w, b):
        return v @ w.T + b

    def lrelu(v):
        return jnp.where(v >= 0, v, 0.2 * v)

    def conv_ref(v, w, b, s):
        out = jax.lax.conv_general_dilated(
            v, w, (s, s), "VALID", dimension_numbers=("NCHW", "OIHW", "NCHW"))
        return out + b.reshape(1, -1, 1, 1)

    def pool_ref(v, k, s):
        n, c, h, w = v.shape
        ho = -(-(h - k) // s) + 1
        wo = -(-(w - k) // s) + 1
        hp, wp = (ho - 1) * s + k, (wo - 1) * s + k
        vp = jnp.pad(v, ((0, 0), (0, 0), (0, hp - h), (0, wp - w)),
                     constant_values=-jnp.inf)
        return jax.lax.reduce_window(vp, -jnp.inf, jax.lax.max,
                                     (1, 1, k, k), (1, 1, s, s), "VALID")

    h = pool_ref(conv_ref(x, params["conv1_w"], params["conv1_b"], 3), 2, 2)
    h = pool_ref(conv_ref(h, params["conv2_w"], params["conv2_b"], 1), 2, 1)
    out = lin(h.reshape(-1, 2 * ndf), params["femb_w"], params["femb_b"])

    def head(v, w1, b1, w2, b2, sig):
        r = lin(lrelu(lin(v, w1, b1)), w2, b2)
        return jax.nn.sigmoid(r) if sig else r

    output_s = head(out, params["s1_w"], params["s1_b"],
                    params["s2_w"], params["s2_b"], True).reshape(-1)
    output_c = head(out, params["c1_w"], params["c1_b"],
                    params["c2_w"], params["c2_b"], False)
    output_s_f = head(f_emb, params["s1_w"], params["s1_b"],
                      params["s2_w"], params["s2_b"], True).reshape(-1)
    output_c_f = head(f_emb, params["c1_w"], params["c1_b"],
                      params["c2_w"], params["c2_b"], False)
    return output_s, output_c, output_s_f, output_c_f


# --------------------------------- main --------------------------------------

if __name__ == "__main__":
    NDF, NCLASSES = 8, 4
    key = jax.random.PRNGKey(0)
    kp, kx, kf = jax.random.split(key, 3)
    params = init_params(kp, NDF, NCLASSES)

    # 21x21 input: 21 -conv(3,3)-> 7 -pool(2,2,ceil)-> 4 -conv(3,1)-> 2
    # -pool(2,1,ceil)-> 1, so the feature extractor ends at 1x1 spatial as the
    # reference module's .view(-1, ndf*2) requires.
    x = jax.random.normal(kx, (2, 1, 21, 21), jnp.float32)
    f_emb = jax.random.normal(kf, (3, NDF), jnp.float32)

    packed = pack_params(params, NDF, NCLASSES, cin=x.shape[1])   # once, not per call
    consts = build_constants(x.shape[0], x.shape[1], x.shape[2], x.shape[3])

    fwd = jax.jit(lambda p, c, xx, fe: netd_forward(p, c, xx, fe, NDF, NCLASSES))
    outs = jax.block_until_ready(fwd(packed, consts, x, f_emb))
    refs = netd_forward_ref(params, x, f_emb, NDF)

    assert outs[0].shape == (2,) and outs[1].shape == (2, NCLASSES)
    assert outs[2].shape == (3,) and outs[3].shape == (3, NCLASSES)
    # Tolerance accounts for the TPU's default (bf16-pass) f32 matmul precision
    # used by both the XLA reference convolutions and the kernel's MXU GEMMs.
    for o, r in zip(outs, refs):
        assert o.shape == r.shape
        assert jnp.allclose(o, r, atol=1e-2, rtol=1e-2)

    print("KERNEL_OK")
</pallas_src>

<mosaic_0001>
module attributes {stable_mosaic.version = 11 : i64} {
  func.func @kernel(%arg0: i32, %arg1: memref<32x81xf32, #tpu.memory_space<vmem>>, %arg2: memref<3x8xf32, #tpu.memory_space<vmem>>, %arg3: memref<200x72xf32, #tpu.memory_space<vmem>>, %arg4: memref<32x128xf32, #tpu.memory_space<vmem>>, %arg5: memref<8x128xf32, #tpu.memory_space<vmem>>) attributes {dimension_semantics = [#tpu.dimension_semantics<arbitrary>], iteration_bounds = array<i64: 1>, scalar_prefetch = 0 : i64, scratch_operands = 0 : i64, tpu.core_type = #tpu.core_type<tc>, window_params = [{pipeline_mode = #tpu.pipeline_mode<synchronous>, transform_indices = @transform_0, window_bounds = array<i64: 32, 81>}, {pipeline_mode = #tpu.pipeline_mode<synchronous>, transform_indices = @transform_1, window_bounds = array<i64: 3, 8>}, {pipeline_mode = #tpu.pipeline_mode<synchronous>, transform_indices = @transform_2, window_bounds = array<i64: 200, 72>}, {pipeline_mode = #tpu.pipeline_mode<synchronous>, transform_indices = @transform_3, window_bounds = array<i64: 32, 128>}, {pipeline_mode = #tpu.pipeline_mode<synchronous>, transform_indices = @transform_4, window_bounds = array<i64: 8, 128>}]} {
    %c0 = arith.constant 0 : index
    %c0_0 = arith.constant 0 : index
    %0 = vector.load %arg3[%c0, %c0_0] : memref<200x72xf32, #tpu.memory_space<vmem>>, vector<81x72xf32>
    %c88 = arith.constant 88 : index
    %c0_1 = arith.constant 0 : index
    %1 = vector.load %arg3[%c88, %c0_1] : memref<200x72xf32, #tpu.memory_space<vmem>>, vector<1x72xf32>
    %c96 = arith.constant 96 : index
    %c0_2 = arith.constant 0 : index
    %2 = vector.load %arg3[%c96, %c0_2] : memref<200x72xf32, #tpu.memory_space<vmem>>, vector<72x16xf32>
    %c168 = arith.constant 168 : index
    %c0_3 = arith.constant 0 : index
    %3 = vector.load %arg3[%c168, %c0_3] : memref<200x72xf32, #tpu.memory_space<vmem>>, vector<1x16xf32>
    %c176 = arith.constant 176 : index
    %c0_4 = arith.constant 0 : index
    %4 = vector.load %arg3[%c176, %c0_4] : memref<200x72xf32, #tpu.memory_space<vmem>>, vector<16x8xf32>
    %c192 = arith.constant 192 : index
    %c0_5 = arith.constant 0 : index
    %5 = vector.load %arg3[%c192, %c0_5] : memref<200x72xf32, #tpu.memory_space<vmem>>, vector<1x8xf32>
    %c0_6 = arith.constant 0 : index
    %c0_7 = arith.constant 0 : index
    %6 = vector.load %arg4[%c0_6, %c0_7] : memref<32x128xf32, #tpu.memory_space<vmem>>, vector<8x8xf32>
    %c8 = arith.constant 8 : index
    %c0_8 = arith.constant 0 : index
    %7 = vector.load %arg4[%c8, %c0_8] : memref<32x128xf32, #tpu.memory_space<vmem>>, vector<1x8xf32>
    %c16 = arith.constant 16 : index
    %c0_9 = arith.constant 0 : index
    %8 = vector.load %arg4[%c16, %c0_9] : memref<32x128xf32, #tpu.memory_space<vmem>>, vector<8x128xf32>
    %c24 = arith.constant 24 : index
    %c0_10 = arith.constant 0 : index
    %9 = vector.load %arg4[%c24, %c0_10] : memref<32x128xf32, #tpu.memory_space<vmem>>, vector<1x128xf32>
    %c0_11 = arith.constant 0 : index
    %c0_12 = arith.constant 0 : index
    %10 = vector.load %arg1[%c0_11, %c0_12] : memref<32x81xf32, #tpu.memory_space<vmem>>, vector<32x81xf32>
    %cst = arith.constant dense<0.000000e+00> : vector<32x72xf32>
    %11 = tpu.matmul %10, %0, %cst {dimension_numbers = #tpu.dot_dimension_numbers<[1], [0], [0], [1], [0, 0, 1, 1], [], []>} : vector<32x81xf32>, vector<81x72xf32>, vector<32x72xf32> -> vector<32x72xf32>
    %12 = vector.broadcast %1 : vector<1x72xf32> to vector<32x72xf32>
    %13 = arith.addf %11, %12 : vector<32x72xf32>
    %14 = vector.extract_strided_slice %13 {offsets = [0, 0], sizes = [8, 72], strides = [1, 1]} : vector<32x72xf32> to vector<8x72xf32>
    %15 = vector.extract_strided_slice %13 {offsets = [8, 0], sizes = [8, 72], strides = [1, 1]} : vector<32x72xf32> to vector<8x72xf32>
    %16 = arith.maximumf %14, %15 : vector<8x72xf32>
    %17 = vector.extract_strided_slice %13 {offsets = [16, 0], sizes = [8, 72], strides = [1, 1]} : vector<32x72xf32> to vector<8x72xf32>
    %18 = arith.maximumf %16, %17 : vector<8x72xf32>
    %19 = vector.extract_strided_slice %13 {offsets = [24, 0], sizes = [8, 72], strides = [1, 1]} : vector<32x72xf32> to vector<8x72xf32>
    %20 = arith.maximumf %18, %19 : vector<8x72xf32>
    %cst_13 = arith.constant dense<0.000000e+00> : vector<8x16xf32>
    %21 = tpu.matmul %20, %2, %cst_13 {dimension_numbers = #tpu.dot_dimension_numbers<[1], [0], [0], [1], [0, 0, 1, 1], [], []>} : vector<8x72xf32>, vector<72x16xf32>, vector<8x16xf32> -> vector<8x16xf32>
    %22 = vector.broadcast %3 : vector<1x16xf32> to vector<8x16xf32>
    %23 = arith.addf %21, %22 : vector<8x16xf32>
    %24 = vector.extract_strided_slice %23 {offsets = [0, 0], sizes = [2, 16], strides = [1, 1]} : vector<8x16xf32> to vector<2x16xf32>
    %25 = vector.extract_strided_slice %23 {offsets = [2, 0], sizes = [2, 16], strides = [1, 1]} : vector<8x16xf32> to vector<2x16xf32>
    %26 = arith.maximumf %24, %25 : vector<2x16xf32>
    %27 = vector.extract_strided_slice %23 {offsets = [4, 0], sizes = [2, 16], strides = [1, 1]} : vector<8x16xf32> to vector<2x16xf32>
    %28 = arith.maximumf %26, %27 : vector<2x16xf32>
    %29 = vector.extract_strided_slice %23 {offsets = [6, 0], sizes = [2, 16], strides = [1, 1]} : vector<8x16xf32> to vector<2x16xf32>
    %30 = arith.maximumf %28, %29 : vector<2x16xf32>
    %cst_14 = arith.constant dense<0.000000e+00> : vector<2x8xf32>
    %31 = tpu.matmul %30, %4, %cst_14 {dimension_numbers = #tpu.dot_dimension_numbers<[1], [0], [0], [1], [0, 0, 1, 1], [], []>} : vector<2x16xf32>, vector<16x8xf32>, vector<2x8xf32> -> vector<2x8xf32>
    %32 = vector.broadcast %5 : vector<1x8xf32> to vector<2x8xf32>
    %33 = arith.addf %31, %32 : vector<2x8xf32>
    %c0_15 = arith.constant 0 : index
    %c0_16 = arith.constant 0 : index
    %34 = vector.load %arg2[%c0_15, %c0_16] : memref<3x8xf32, #tpu.memory_space<vmem>>, vector<3x8xf32>
    %cst_17 = arith.constant 0.000000e+00 : f32
    %35 = vector.broadcast %cst_17 : f32 to vector<3x8xf32>
    %36 = tpu.concatenate %33, %34, %35 in 0 : vector<2x8xf32>, vector<3x8xf32>, vector<3x8xf32> -> vector<8x8xf32>
    %cst_18 = arith.constant dense<0.000000e+00> : vector<8x8xf32>
    %37 = tpu.matmul %36, %6, %cst_18 {dimension_numbers = #tpu.dot_dimension_numbers<[1], [0], [0], [1], [0, 0, 1, 1], [], []>} : vector<8x8xf32>, vector<8x8xf32>, vector<8x8xf32> -> vector<8x8xf32>
    %38 = vector.broadcast %7 : vector<1x8xf32> to vector<8x8xf32>
    %39 = arith.addf %37, %38 : vector<8x8xf32>
    %cst_19 = arith.constant 0.000000e+00 : f32
    %40 = vector.broadcast %cst_19 : f32 to vector<8x8xf32>
    %41 = arith.cmpf oge, %39, %40 : vector<8x8xf32>
    %cst_20 = arith.constant 2.000000e-01 : f32
    %42 = vector.broadcast %cst_20 : f32 to vector<8x8xf32>
    %43 = arith.mulf %42, %39 : vector<8x8xf32>
    %44 = arith.select %41, %39, %43 : vector<8x8xi1>, vector<8x8xf32>
    %cst_21 = arith.constant dense<0.000000e+00> : vector<8x128xf32>
    %45 = tpu.matmul %44, %8, %cst_21 {dimension_numbers = #tpu.dot_dimension_numbers<[1], [0], [0], [1], [0, 0, 1, 1], [], []>} : vector<8x8xf32>, vector<8x128xf32>, vector<8x128xf32> -> vector<8x128xf32>
    %46 = vector.broadcast %9 : vector<1x128xf32> to vector<8x128xf32>
    %47 = arith.addf %45, %46 : vector<8x128xf32>
    %48 = tpu.iota {dimensions = array<i32: 1>} : vector<8x128xi32>
    %c0_i32 = arith.constant 0 : i32
    %49 = vector.broadcast %c0_i32 : i32 to vector<8x128xi32>
    %50 = arith.cmpi eq, %48, %49 : vector<8x128xi32>
    %51 = arith.negf %47 : vector<8x128xf32>
    %52 = math.exp %51 : vector<8x128xf32>
    %cst_22 = arith.constant 1.000000e+00 : f32
    %53 = vector.broadcast %cst_22 : f32 to vector<8x128xf32>
    %54 = arith.addf %53, %52 : vector<8x128xf32>
    %55 = arith.divf %53, %54 : vector<8x128xf32>
    %56 = arith.select %50, %55, %47 : vector<8x128xi1>, vector<8x128xf32>
    %c0_23 = arith.constant 0 : index
    %c0_24 = arith.constant 0 : index
    %57 = vector.load %arg5[%c0_23, %c0_24] : memref<8x128xf32, #tpu.memory_space<vmem>>, vector<8x128xf32>
    tpu.vector_store %arg5[%c0_23, %c0_24], %56 {strides = array<i32>} : memref<8x128xf32, #tpu.memory_space<vmem>>, vector<8x128xf32>,
    return
  }
  func.func @transform_0(%arg0: i32) -> (i32, i32) {
    %c0_i32 = arith.constant 0 : i32
    %c0_i32_0 = arith.constant 0 : i32
    %c0_i32_1 = arith.constant 0 : i32
    return %c0_i32, %c0_i32_0 : i32, i32
  }
  func.func @transform_1(%arg0: i32) -> (i32, i32) {
    %c0_i32 = arith.constant 0 : i32
    %c0_i32_0 = arith.constant 0 : i32
    %c0_i32_1 = arith.constant 0 : i32
    return %c0_i32, %c0_i32_0 : i32, i32
  }
  func.func @transform_2(%arg0: i32) -> (i32, i32) {
    %c0_i32 = arith.constant 0 : i32
    %c0_i32_0 = arith.constant 0 : i32
    %c0_i32_1 = arith.constant 0 : i32
    return %c0_i32, %c0_i32_0 : i32, i32
  }
  func.func @transform_3(%arg0: i32) -> (i32, i32) {
    %c0_i32 = arith.constant 0 : i32
    %c0_i32_0 = arith.constant 0 : i32
    %c0_i32_1 = arith.constant 0 : i32
    return %c0_i32, %c0_i32_0 : i32, i32
  }
  func.func @transform_4(%arg0: i32) -> (i32, i32) {
    %c0_i32 = arith.constant 0 : i32
    %c0_i32_0 = arith.constant 0 : i32
    %c0_i32_1 = arith.constant 0 : i32
    return %c0_i32, %c0_i32_0 : i32, i32
  }
}

</mosaic_0001>

<bundles_post_ra>
// kernel: _lambda_.1
= control target key start
LH: loop header
LB: loop body
LE: loop exit
PB: predicated region body
PF: predicated region fallthrough
CT: control target
= control target key end

     0   :  { %vm67_vm0 = vcmask 1040384   ;;  %v625_v2 = vmov 0.0   ;;  %vm54_vm1 = vcmask 662528   ;;  %vm626_vm2 = vmmov 0   ;;  %s782_s2 = inlined_call_operand.vmem [shape: f32[200,72], index: 2, kind: input, shape index: {}]   ;;  %s783_s0 = inlined_call_operand.vmem [shape: f32[32,81], index: 0, kind: input, shape index: {}]   ;;  %s784_s3 = inlined_call_operand.vmem [shape: f32[32,128], index: 3, kind: input, shape index: {}]   ;;  %s785_s1 = inlined_call_operand.vmem [shape: f32[3,8], index: 1, kind: input, shape index: {}]   ;;  %s786_s4 = inlined_call_operand.vmem [shape: f32[8,128], index: 4, kind: output, shape index: {}]  }
   0x1   :  { %v27_v0 = vld [vmem:[%s782_s2 + $0x50] sm:$0x1]  ;;  %v26_v1 = vld [vmem:[%s782_s2 + $0x48] sm:$0xff]  ;;  %581 = vmatprep.subr.mxu1 %v625_v2  ;;  %v25_v3 = vld [vmem:[%s782_s2 + $0x40] sm:$0xff]  ;;  %599 = vmatprep.mubr.msk.f32.mxu1 %vm626_vm2, %v625_v2  ;;  %vm163_vm3 = vcmask 588800   ;;  %vm251_vm4 = vcmask 130048  }
   0x2   :  { %553 = vmatprep.subr.msk.mxu0 %vm67_vm0, %v27_v0  ;;  %v46_v4 = vld [vmem:[%s783_s0] sm:$0xff]  ;;  %v24_v5 = vld [vmem:[%s782_s2 + $0x38] sm:$0xff]  ;;  %v23_v8 = vld [vmem:[%s782_s2 + $0x30] sm:$0xff]  ;;  %vm329_vm5 = vcmask 1041408   ;;  %vm331_vm6 = vcmask 1044480   ;;  %vm337_vm7 = vcmask 64512  }
   0x3   :  { %554 = vmatpush3.msk.msra.mxu0 %vm67_vm0, %v27_v0  ;;  %575 = vmatprep.mubr.msk.f32.mxu0 %vm54_vm1, %v46_v4  ;;  %v37_v6 = vld [vmem:[%s782_s2 + $0xa0] sm:$0xff]  ;;  %v36_v7 = vld [vmem:[%s782_s2 + $0x98] sm:$0xff]  ;;  %v22_v9 = vld [vmem:[%s782_s2 + $0x28] sm:$0xff] }
   0x4   :  { %555 = vmatprep.subr.mxu0 %v26_v1  ;;  %582 = vmatpush3.msra.mxu1 %v37_v6  ;;  %v21_v10 = vld [vmem:[%s782_s2 + $0x20] sm:$0xff]  ;;  %v20_v11 = vld [vmem:[%s782_s2 + $0x18] sm:$0xff]  ;;  %v19_v12 = vld [vmem:[%s782_s2 + $0x10] sm:$0xff] }
   0x5   :  { %556 = vmatpush3.msra.mxu0 %v26_v1  ;;  %583 = vmatprep.subr.mxu1 %v625_v2  ;;  %v18_v13 = vld [vmem:[%s782_s2 + $0x8] sm:$0xff]  ;;  %v17_v14 = vld [vmem:[%s782_s2] sm:$0xff]  ;;  %v48_v16 = vld [vmem:[%s783_s0 + $0x10] sm:$0xff] }
   0x6   :  { %557 = vmatprep.subr.mxu0 %v25_v3  ;;  %584 = vmatpush3.msra.mxu1 %v36_v7  ;;  %v47_v15 = vld [vmem:[%s783_s0 + $0x8] sm:$0xff]  ;;  %v49_v17 = vld [vmem:[%s783_s0 + $0x18] sm:$0xff]  ;;  %v35_v18 = vld [vmem:[%s782_s2 + $0x90] sm:$0xff] }
   0x7   :  { %558 = vmatpush3.msra.mxu0 %v25_v3  ;;  %585 = vmatprep.subr.mxu1 %v625_v2  ;;  %v34_v19 = vld [vmem:[%s782_s2 + $0x88] sm:$0xff]  ;;  %v33_v20 = vld [vmem:[%s782_s2 + $0x80] sm:$0xff]  ;;  %v32_v21 = vld [vmem:[%s782_s2 + $0x78] sm:$0xff] }
   0x8   :  { %559 = vmatprep.subr.mxu0 %v24_v5  ;;  %586 = vmatpush3.msra.mxu1 %v35_v18  ;;  %v31_v22 = vld [vmem:[%s782_s2 + $0x70] sm:$0xff]  ;;  %v30_v23 = vld [vmem:[%s782_s2 + $0x68] sm:$0xff]  ;;  %v29_v24 = vld [vmem:[%s782_s2 + $0x60] sm:$0xff] }
   0x9   :  { %560 = vmatpush3.msra.mxu0 %v24_v5  ;;  %587 = vmatprep.subr.mxu1 %v625_v2  ;;  %v506_v26 = vld [vmem:[%s782_s2 + $0x58] ss:$0 sm:$0xff]  ;;  %v39_v38 = vld [vmem:[%s782_s2 + $0xb0] sm:$0xff]  ;;  %v512_v39 = vld [vmem:[%s782_s2 + $0xa8] ss:$0 sm:$0xff] }
   0xa   :  { %561 = vmatprep.subr.mxu0 %v23_v8  ;;  %588 = vmatpush3.msra.mxu1 %v34_v19  ;;  %v40_v37 = vld [vmem:[%s782_s2 + $0xb8] sm:$0xff]  ;;  %v42_v49 = vld [vmem:[%s784_s3] sm:$0xff]  ;;  %v44_v50 = vld [vmem:[%s784_s3 + $0x10] sm:$0xff] }
   0xb   :  { %562 = vmatpush3.msra.mxu0 %v23_v8  ;;  %589 = vmatprep.subr.mxu1 %v625_v2  ;;  %v325_v51 = vld [vmem:[%s785_s1] sm:$0x7]  ;;  %v516_v59 = vld [vmem:[%s784_s3 + $0x8] ss:$0 sm:$0xff]  ;;  %v518_v1 = vld [vmem:[%s784_s3 + $0x18] ss:$0 sm:$0xff]  ;;  %v491_v8 = vlaneseq }
   0xc   :  { %563 = vmatprep.subr.mxu0 %v22_v9  ;;  %590 = vmatpush3.msra.mxu1 %v33_v20  ;;  %v514_v52 = vld [vmem:[%s782_s2 + $0xc0] ss:$0 sm:$0xff]  ;;  %v327_v53 = vrot.slane %v325_v51, 6 }
   0xd   :  { %564 = vmatpush3.msra.mxu0 %v22_v9  ;;  %591 = vmatprep.subr.mxu1 %v625_v2  ;;  %v492_v9 = vand.u32 127, %v491_v8 }
   0xe   :  { %565 = vmatprep.subr.mxu0 %v21_v10  ;;  %592 = vmatpush3.msra.mxu1 %v32_v21 }
   0xf   :  { %566 = vmatpush3.msra.mxu0 %v21_v10  ;;  %593 = vmatprep.subr.mxu1 %v625_v2  ;;  %vm493_vm9 = vcmp.eq.s32.totalorder %v492_v9, 0 }
  0x10   :  { %567 = vmatprep.subr.mxu0 %v20_v11  ;;  %594 = vmatpush3.msra.mxu1 %v31_v22 }
  0x11   :  { %568 = vmatpush3.msra.mxu0 %v20_v11  ;;  %595 = vmatprep.subr.mxu1 %v625_v2 }
  0x12   :  { %569 = vmatprep.subr.mxu0 %v19_v12  ;;  %596 = vmatpush3.msra.mxu1 %v30_v23 }
  0x13   :  { %570 = vmatpush3.msra.mxu0 %v19_v12  ;;  %597 = vmatprep.subr.mxu1 %v625_v2 }
  0x14   :  { %571 = vmatprep.subr.mxu0 %v18_v13  ;;  %598 = vmatpush3.msra.mxu1 %v29_v24 }
  0x15   :  { %572 = vmatpush3.msra.mxu0 %v18_v13  ;;  %602 = vmatprep.subr.mxu1 %v625_v2 }
  0x16   :  { %573 = vmatprep.subr.mxu0 %v17_v14 }
  0x17   :  { %574 = vmatpush3.msra.mxu0 %v17_v14 }
  0x18   :  { %576 = vmatmul.mubr.msk.f32.vlgmr.msra.gmra.mxu0 %vm54_vm1, %v47_v15  ;;  %614 = vmatprep.subr.mxu0 %v625_v2 }
  0x19   :  { %578 = vmatprep.mubr.msk.f32.mxu0 %vm54_vm1, %v48_v16  ;;  %615 = vmatpush3.msra.mxu0 %v44_v50 }
  0x1c   :  { %579 = vmatmul.mubr.msk.f32.gmra.mxu0 %vm54_vm1, %v49_v17 }
  0x1d   :  { %616 = vmatprep.mubr.msk.f32.mxu0 %vm626_vm2, %v625_v2 }
  0xd8   :  { %v577_v25 = vpop.f32.mrf.mxu0 }
  0xd9   :  { %v143_v30 = vadd.f32 %v577_v25, %v506_v26 }
  0xda   :  { %v137_v27 = vpop.f32.mrf.mxu0 }
  0xdb   :  { %v138_v28 = vadd.f32 %v506_v26, %v137_v27 }
  0xdc   :  { %v580_v29 = vpop.f32.mrf.mxu0 }
  0xdd   :  { %v156_v32 = vmax.f32 %v138_v28, %v143_v30  ;;  %v153_v34 = vadd.f32 %v580_v29, %v506_v26 }
  0xde   :  { %v147_v31 = vpop.f32.mrf.mxu0 }
  0xdf   :  { %v148_v33 = vadd.f32 %v506_v26, %v147_v31 }
  0xe1   :  { %v157_v35 = vmax.f32 %v156_v32, %v148_v33 }
  0xe3   :  { %v158_v36 = vmax.f32 %v157_v35, %v153_v34 }
  0xe5   :  { %600 = vmatmul.mubr.msk.f32.vlgmr.msra.gmra.mxu1 %vm163_vm3, %v158_v36 }
  0xe6   :  { %606 = vmatprep.mubr.msk.f32.mxu1 %vm626_vm2, %v625_v2  ;;  %603 = vmatpush3.msra.mxu1 %v40_v37 }
  0xe7   :  { %604 = vmatprep.subr.mxu1 %v625_v2 }
  0xe8   :  { %605 = vmatpush3.msra.mxu1 %v39_v38 }
  0xe9   :  { %609 = vmatprep.subr.mxu1 %v625_v2 }
 0x1a5   :  { %v233_v40 = vpop.f32.mrf.mxu1 }
 0x1a6   :  { %v234_v41 = vadd.f32 %v512_v39, %v233_v40 }
 0x1a7   :  { %v601_v42 = vpop.f32.mrf.mxu1 }
 0x1a8   :  { %v238_v43 = vrot.slane %v234_v41, 2  ;;  %v241_v45 = vrot.slane %v234_v41, 4  ;;  %v244_v47 = vrot.slane %v234_v41, 6 }
 0x1aa   :  { %v240_v44 = vmax.f32 %v234_v41, %v238_v43 }
 0x1ac   :  { %v243_v46 = vmax.f32 %v240_v44, %v241_v45 }
 0x1ae   :  { %v246_v48 = vmax.f32 %v243_v46, %v244_v47 }
 0x1b0   :  { %607 = vmatmul.mubr.msk.f32.vlgmr.msra.gmra.mxu1 %vm251_vm4, %v246_v48 }
 0x1b1   :  { %611 = vmatprep.mubr.msk.f32.mxu1 %vm626_vm2, %v625_v2  ;;  %610 = vmatpush3.msra.mxu1 %v42_v49 }
 0x270   :  { %v321_v54 = vpop.f32.mrf.mxu1 }
 0x271   :  { %v322_v55 = vadd.f32 %v514_v52, %v321_v54 }
 0x272   :  { %v608_v56 = vpop.f32.mrf.mxu1 }
 0x273   :  { %v330_v57 = vsel %vm329_vm5, %v322_v55, %v327_v53 }
 0x274   :  { %v332_v58 = vsel %vm331_vm6, %v330_v57, 0.0 }
 0x275   :  { %612 = vmatmul.mubr.msk.f32.vlgmr.msra.gmra.mxu1 %vm337_vm7, %v332_v58 }
 0x335   :  { %v407_v60 = vpop.f32.mrf.mxu1 }
 0x336   :  { %v408_v61 = vadd.f32 %v516_v59, %v407_v60 }
 0x337   :  { %v613_v62 = vpop.f32.mrf.mxu1 }
 0x338   :  { %vm411_vm8 = vcmp.ge.f32.partialorder %v408_v61, 0.0  ;;  %v412_v63 = vmul.f32 0.2, %v408_v61 }
 0x33a   :  { %v413_v0 = vsel %vm411_vm8, %v408_v61, %v412_v63 }
 0x33b   :  { %617 = vmatmul.mubr.msk.f32.vlgmr.msra.gmra.mxu0 %vm337_vm7, %v413_v0 }
 0x3fb   :  { %v487_v2 = vpop.f32.mrf.mxu0 }
 0x3fc   :  { %v488_v3 = vadd.f32 %v518_v1, %v487_v2 }
 0x3fd   :  { %v618_v4 = vpop.f32.mrf.mxu0 }
 0x3fe   :  { %v520_v5 = vmul.f32 -1.442695, %v488_v3 }
 0x400   :  { %621 = vpow2.f32 %v520_v5 }
 0x40d   :  { %v622_v6 = vpop.eup %621 }
 0x40e   :  { %v497_v7 = vadd.f32 1.0, %v622_v6 }
 0x410   :  { %623 = vrcp.f32 %v497_v7 }
 0x41d   :  { %v624_v10 = vpop.eup %623 }
 0x41e   :  { %v500_v11 = vsel %vm493_vm9, %v624_v10, %v488_v3 }
 0x41f   :  { %501 = vst [vmem:[%s786_s4] sm:$0xff] %v500_v11 }

</bundles_post_ra>
